<compile_context>
chip_gen: v7x
topology: tpu7x:2x2x1
jax: 0.10.0
libtpu: 0.0.40
codegen_flags: <defaults>
</compile_context>

<pallas_src>
import math

import jax
import jax.numpy as jnp
from jax.experimental import pallas as pl
from jax.experimental.pallas import tpu as pltpu


_LANE = 128
_MIB = 1024 * 1024


def _tuning():
    """(target_block_bytes, max_block_bytes, vmem_limit_bytes), generation-aware.

    Defaults are v7x-safe (64 MiB physical VMEM): 8 MiB blocks, 4x pipelined
    footprint ~32-40 MiB under a 48 MiB scoped limit. On 128 MiB-VMEM chips
    (v5e/v6e) go to ~16 MiB blocks with a larger scoped limit.
    """
    target, max_block, vmem_limit = 8 * _MIB, 10 * _MIB, 48 * _MIB
    try:
        vmem = getattr(pltpu.get_tpu_info(), "vmem_capacity_bytes", None)
        if vmem is not None and vmem >= 96 * _MIB:
            target, max_block, vmem_limit = 16 * _MIB, 20 * _MIB, 88 * _MIB
    except Exception:
        pass  # fall back to the conservative (v7x-safe) settings
    return target, max_block, vmem_limit


def _make_affine_kernel(C: int):
    def kernel(scale_ref, bias_ref, x_ref, o_ref):
        # scale_ref / bias_ref: (C,) f32 scalars in SMEM.
        # x_ref / o_ref: (rows, hw_tile) VMEM tiles; rows is a multiple of C
        # (or the full extent), and every block starts at channel 0.
        rows = x_ref.shape[0]
        ch = jax.lax.broadcasted_iota(jnp.int32, (rows, 1), 0) % C
        scale = jnp.full((rows, 1), scale_ref[C - 1], jnp.float32)
        bias = jnp.full((rows, 1), bias_ref[C - 1], jnp.float32)
        for c in range(C - 1):  # tiny static unroll (C == 3)
            scale = jnp.where(ch == c, scale_ref[c], scale)
            bias = jnp.where(ch == c, bias_ref[c], bias)
        x = x_ref[...].astype(jnp.float32)
        o_ref[...] = (x * scale + bias).astype(o_ref.dtype)

    return kernel


def image_normalize(x_nchw: jax.Array, mean: jax.Array, std: jax.Array) -> jax.Array:
    """(x - mean) / std, matching ImageNormalizer.forward."""
    N, C, H, W = x_nchw.shape
    HW = H * W
    rows_total = N * C

    # PyTorch promotes integer images to float when subtracting a float buffer.
    out_dtype = (
        x_nchw.dtype if jnp.issubdtype(x_nchw.dtype, jnp.floating) else jnp.float32
    )
    in_item = jnp.dtype(x_nchw.dtype).itemsize
    out_item = jnp.dtype(out_dtype).itemsize
    size_item = max(in_item, out_item)

    # Affine constants in f32: scale = 1/std, bias = -mean/std.
    mean_f = jnp.asarray(mean, jnp.float32).reshape(-1)
    std_f = jnp.asarray(std, jnp.float32).reshape(-1)
    scale = 1.0 / std_f
    bias = -mean_f * scale

    # dtype-aware sublane packing: 8 rows/vreg for 32-bit, 16 for bf16, 32 for i8.
    sublane_pack = max(8, 32 // in_item)
    row_align = (sublane_pack * C) // math.gcd(sublane_pack, C)

    target_bytes, max_block_bytes, vmem_limit = _tuning()

    # Lane (spatial) tile: keep full rows contiguous (single-descriptor DMA)
    # unless even one row-aligned group of full rows would exceed the cap.
    if HW <= _LANE or HW * size_item * row_align <= max_block_bytes:
        hw_tile = HW
    else:
        hw_tile = max(
            _LANE, (target_bytes // (row_align * size_item)) // _LANE * _LANE
        )

    # Row tile: as many row_align groups as fit in the target block.
    rows_per_block = max(1, target_bytes // (hw_tile * size_item))
    rows_per_block = max(row_align, (rows_per_block // row_align) * row_align)
    if rows_per_block >= rows_total:
        rows_per_block = rows_total  # full extent (always a multiple of C)

    # Guarantee >= 2 grid blocks for non-trivial payloads so the "parallel"
    # axes can shard across v7x's two TensorCores.
    n_row_blocks = -(-rows_total // rows_per_block)
    n_hw_blocks = -(-HW // hw_tile)
    total_bytes = rows_total * HW * size_item
    if total_bytes > 4 * _MIB and n_row_blocks * n_hw_blocks < 2:
        half = (rows_total // (2 * row_align)) * row_align
        if half >= row_align:
            rows_per_block = half

    x2d = x_nchw.reshape(rows_total, HW)
    grid = (pl.cdiv(rows_total, rows_per_block), pl.cdiv(HW, hw_tile))

    out2d = pl.pallas_call(
        _make_affine_kernel(C),
        out_shape=jax.ShapeDtypeStruct((rows_total, HW), out_dtype),
        grid_spec=pltpu.PrefetchScalarGridSpec(
            num_scalar_prefetch=0,
            grid=grid,
            in_specs=[
                # Tiny per-channel constants live in SMEM (no VMEM padding/DMA).
                pl.BlockSpec(memory_space=pltpu.MemorySpace.SMEM),
                pl.BlockSpec(memory_space=pltpu.MemorySpace.SMEM),
                pl.BlockSpec((rows_per_block, hw_tile), lambda i, j: (i, j)),
            ],
            out_specs=pl.BlockSpec((rows_per_block, hw_tile), lambda i, j: (i, j)),
        ),
        compiler_params=pltpu.CompilerParams(
            dimension_semantics=("parallel", "parallel"),
            vmem_limit_bytes=vmem_limit,
        ),
        cost_estimate=pl.CostEstimate(
            flops=2 * rows_total * HW,
            transcendentals=0,
            bytes_accessed=rows_total * HW * (in_item + out_item),
        ),
    )(scale, bias, x2d)

    return out2d.reshape(N, C, H, W)


if __name__ == "__main__":
    # Deterministic "buffers" (CIFAR-10-style constants, as in robustbench usage).
    mean = jnp.array([0.4914, 0.4822, 0.4465], dtype=jnp.float32)
    std = jnp.array([0.2471, 0.2435, 0.2616], dtype=jnp.float32)

    # Small NCHW input consistent with the module: batch=2, channels=3, spatial=16.
    key = jax.random.PRNGKey(0)
    x = jax.random.uniform(key, (2, 3, 16, 16), dtype=jnp.float32)

    out = image_normalize(x, mean, std)
    out = jax.block_until_ready(out)

    # Reference in plain JAX (mirrors the PyTorch forward exactly).
    ref = (x - mean.reshape(1, 3, 1, 1)) / std.reshape(1, 3, 1, 1)
    assert out.shape == x.shape and out.dtype == x.dtype
    # scale/bias folding differs from the explicit divide by <= a couple ulp.
    assert jnp.allclose(out, ref, atol=1e-5, rtol=1e-5)

    print("KERNEL_OK")
</pallas_src>

<mosaic_0001>
module attributes {stable_mosaic.version = 11 : i64} {
  func.func @kernel(%arg0: i32, %arg1: i32, %arg2: memref<3xf32, #tpu.memory_space<smem>>, %arg3: memref<3xf32, #tpu.memory_space<smem>>, %arg4: memref<6x256xf32, #tpu.memory_space<vmem>>, %arg5: memref<6x256xf32, #tpu.memory_space<vmem>>) attributes {dimension_semantics = [#tpu.dimension_semantics<parallel>, #tpu.dimension_semantics<parallel>], iteration_bounds = array<i64: 1, 1>, scalar_prefetch = 0 : i64, scratch_operands = 0 : i64, tpu.core_type = #tpu.core_type<tc>, window_params = [{transform_indices = @transform_0, window_bounds = array<i64: 3>}, {transform_indices = @transform_1, window_bounds = array<i64: 3>}, {transform_indices = @transform_2, window_bounds = array<i64: 6, 256>}, {transform_indices = @transform_3, window_bounds = array<i64: 6, 256>}]} {
    %0 = tpu.iota {dimensions = array<i32: 0>} : vector<6x1xi32>
    %c3_i32 = arith.constant 3 : i32
    %c0_i32 = arith.constant 0 : i32
    %1 = arith.cmpi eq, %c3_i32, %c0_i32 : i32
    %c1_i32 = arith.constant 1 : i32
    %2 = arith.select %1, %c1_i32, %c3_i32 : i32
    %3 = vector.broadcast %2 : i32 to vector<6x1xi32>
    %4 = arith.remsi %0, %3 : vector<6x1xi32>
    %c0_i32_0 = arith.constant 0 : i32
    %5 = vector.broadcast %c0_i32_0 : i32 to vector<6x1xi32>
    %6 = arith.cmpi ne, %4, %5 : vector<6x1xi32>
    %c0_i32_1 = arith.constant 0 : i32
    %7 = vector.broadcast %c0_i32_1 : i32 to vector<6x1xi32>
    %8 = arith.cmpi slt, %4, %7 : vector<6x1xi32>
    %c0_i32_2 = arith.constant 0 : i32
    %9 = arith.cmpi slt, %2, %c0_i32_2 : i32
    %10 = vector.broadcast %9 : i1 to vector<6x1xi1>
    %11 = vector.broadcast %10 : vector<6x1xi1> to vector<6x1xi1>
    %12 = arith.xori %8, %11 : vector<6x1xi1>
    %13 = arith.andi %12, %6 : vector<6x1xi1>
    %14 = vector.broadcast %2 : i32 to vector<6x1xi32>
    %15 = arith.addi %4, %14 : vector<6x1xi32>
    %16 = arith.select %13, %15, %4 : vector<6x1xi1>, vector<6x1xi32>
    %c2 = arith.constant 2 : index
    %17 = memref.load %arg2[%c2] : memref<3xf32, #tpu.memory_space<smem>>
    %18 = vector.broadcast %17 : f32 to vector<6x1xf32>
    %c2_3 = arith.constant 2 : index
    %19 = memref.load %arg3[%c2_3] : memref<3xf32, #tpu.memory_space<smem>>
    %20 = vector.broadcast %19 : f32 to vector<6x1xf32>
    %c0_i32_4 = arith.constant 0 : i32
    %21 = vector.broadcast %c0_i32_4 : i32 to vector<6x1xi32>
    %22 = arith.cmpi eq, %16, %21 : vector<6x1xi32>
    %c0 = arith.constant 0 : index
    %23 = memref.load %arg2[%c0] : memref<3xf32, #tpu.memory_space<smem>>
    %24 = vector.broadcast %23 : f32 to vector<6x1xf32>
    %25 = arith.select %22, %24, %18 : vector<6x1xi1>, vector<6x1xf32>
    %c0_i32_5 = arith.constant 0 : i32
    %26 = vector.broadcast %c0_i32_5 : i32 to vector<6x1xi32>
    %27 = arith.cmpi eq, %16, %26 : vector<6x1xi32>
    %c0_6 = arith.constant 0 : index
    %28 = memref.load %arg3[%c0_6] : memref<3xf32, #tpu.memory_space<smem>>
    %29 = vector.broadcast %28 : f32 to vector<6x1xf32>
    %30 = arith.select %27, %29, %20 : vector<6x1xi1>, vector<6x1xf32>
    %c1_i32_7 = arith.constant 1 : i32
    %31 = vector.broadcast %c1_i32_7 : i32 to vector<6x1xi32>
    %32 = arith.cmpi eq, %16, %31 : vector<6x1xi32>
    %c1 = arith.constant 1 : index
    %33 = memref.load %arg2[%c1] : memref<3xf32, #tpu.memory_space<smem>>
    %34 = vector.broadcast %33 : f32 to vector<6x1xf32>
    %35 = arith.select %32, %34, %25 : vector<6x1xi1>, vector<6x1xf32>
    %c1_i32_8 = arith.constant 1 : i32
    %36 = vector.broadcast %c1_i32_8 : i32 to vector<6x1xi32>
    %37 = arith.cmpi eq, %16, %36 : vector<6x1xi32>
    %c1_9 = arith.constant 1 : index
    %38 = memref.load %arg3[%c1_9] : memref<3xf32, #tpu.memory_space<smem>>
    %39 = vector.broadcast %38 : f32 to vector<6x1xf32>
    %40 = arith.select %37, %39, %30 : vector<6x1xi1>, vector<6x1xf32>
    %c0_10 = arith.constant 0 : index
    %c0_11 = arith.constant 0 : index
    %41 = vector.load %arg4[%c0_10, %c0_11] : memref<6x256xf32, #tpu.memory_space<vmem>>, vector<6x256xf32>
    %42 = vector.broadcast %35 : vector<6x1xf32> to vector<6x256xf32>
    %43 = arith.mulf %41, %42 : vector<6x256xf32>
    %44 = vector.broadcast %40 : vector<6x1xf32> to vector<6x256xf32>
    %45 = arith.addf %43, %44 : vector<6x256xf32>
    %c0_12 = arith.constant 0 : index
    %c0_13 = arith.constant 0 : index
    %46 = vector.load %arg5[%c0_12, %c0_13] : memref<6x256xf32, #tpu.memory_space<vmem>>, vector<6x256xf32>
    tpu.vector_store %arg5[%c0_12, %c0_13], %45 {strides = array<i32>} : memref<6x256xf32, #tpu.memory_space<vmem>>, vector<6x256xf32>,
    return
  }
  func.func @transform_0(%arg0: i32, %arg1: i32) -> i32 {
    %c0_i32 = arith.constant 0 : i32
    %c0_i32_0 = arith.constant 0 : i32
    return %c0_i32 : i32
  }
  func.func @transform_1(%arg0: i32, %arg1: i32) -> i32 {
    %c0_i32 = arith.constant 0 : i32
    %c0_i32_0 = arith.constant 0 : i32
    return %c0_i32 : i32
  }
  func.func @transform_2(%arg0: i32, %arg1: i32) -> (i32, i32) {
    %c0_i32 = arith.constant 0 : i32
    return %arg0, %arg1 : i32, i32
  }
  func.func @transform_3(%arg0: i32, %arg1: i32) -> (i32, i32) {
    %c0_i32 = arith.constant 0 : i32
    return %arg0, %arg1 : i32, i32
  }
}

</mosaic_0001>

<bundles_post_ra>
// kernel: tpu_custom_call.1
= control target key start
LH: loop header
LB: loop body
LE: loop exit
PB: predicated region body
PF: predicated region fallthrough
CT: control target
= control target key end

     0   :  { %8 = vsyncpa [#allocation5], 0  ;;  %s262_s0 = inlined_call_operand.hbm [shape: f32[3], index: 0, kind: input, shape index: {}]   ;;  %s263_s1 = inlined_call_operand.vmem [shape: f32[3], index: 1, kind: input, shape index: {}]   ;;  %s264_s2 = inlined_call_operand.hbm [shape: f32[6,256], index: 2, kind: input, shape index: {}]   ;;  %s265_s3 = inlined_call_operand.hbm [shape: f32[6,256], index: 3, kind: output, shape index: {}]  }
   0x1   :  { %9 = vsyncpa [#allocation6], 0 }
   0x2   :  { %10 = vsyncpa [#allocation3], 0 }
   0x3   :  { %11 = vsyncpa [#allocation4], 0  ;;  %s26_s14 = sshll.u32 %s263_s1, 4  ;;  %s121_s17 = scalar_lea.hbm %s262_s0, 16  ;;  %s27_s14 = int_to_ptr.vmem [resolvable:$true] %s26_s14 }
   0x4   :  { %p122_p0 = scmp.ne.s32.totalorder %s262_s0, %s121_s17  ;;  %p125_p1 = scmp.lt.u32.totalorder %s121_s17, %s262_s0 }
   0x6   :  { %p127_p2 = pnand %p125_p1, %p122_p0 }
   0x8   :  { %130 = shalt.err (!%p127_p2)
}
   0x9   :  { %s195_s22 = smov [#allocation2]   ;;  %s131_s1 = scalar_lea.vmem %s27_s14, 16 }
   0xa   :  { %19 = dma.hbm_to_smem %s262_s0, 16, %s195_s22, [#allocation5]  }
   0xb   :  { %p132_p3 = scmp.ne.s32.totalorder %s27_s14, %s131_s1  ;;  %p136_p4 = scmp.lt.s32.totalorder %s27_s14, %s27_s14 }
   0xc   :  { %p137_p5 = scmp.lt.s32.totalorder %s131_s1, %s131_s1 }
   0xe   :  { %p138_p6 = por %p137_p5, %p136_p4 }
  0x10   :  { %p139_p7 = pnand %p138_p6, %p132_p3 }
  0x12   :  { %142 = shalt.err (!%p139_p7)
}
  0x13   :  { %s196_s25 = smov [#allocation7]   ;;  %s197_s26 = smov [#allocation8]  }
  0x14   :  { %29 = dma.vmem_to_smem %s27_s14, 16, %s196_s25, [#allocation6]  }
  0x15   :  { %s36_s27 = sshll.u32 %s197_s26, 4  ;;  %s143_s30 = scalar_lea.hbm %s264_s2, 256  ;;  %s37_s27 = int_to_ptr.vmem [resolvable:$true] %s36_s27 }
  0x16   :  { %p144_p8 = scmp.ne.s32.totalorder %s264_s2, %s143_s30  ;;  %p147_p9 = scmp.lt.u32.totalorder %s143_s30, %s264_s2 }
  0x18   :  { %p149_p10 = pnand %p147_p9, %p144_p8 }
  0x1a   :  { %152 = shalt.err (!%p149_p10)
}
  0x1b   :  { %s153_s7 = scalar_lea.vmem %s37_s27, 256  ;;  %p158_p12 = scmp.lt.s32.totalorder %s37_s27, %s37_s27 }
  0x1c   :  { %p154_p11 = scmp.ne.s32.totalorder %s37_s27, %s153_s7  ;;  %p159_p13 = scmp.lt.s32.totalorder %s153_s7, %s153_s7 }
  0x1e   :  { %p160_p0 = por %p159_p13, %p158_p12 }
  0x20   :  { %p161_p1 = pnand %p160_p0, %p154_p11 }
  0x22   :  { %164 = shalt.err (!%p161_p1)
}
  0x23   :  { %39 = dma.hbm_to_vmem [thread:$0]  %s264_s2, 256, %s37_s27, [#allocation3]  }
  0x24   :  { %187 = dma.done.wait [#allocation5], 16  }
  0x25   :  { %188 = vsyncadd [#allocation5], 4294967280 }
  0x26   :  { %189 = dma.done.wait [#allocation6], 16  }
  0x27   :  { %190 = vsyncadd [#allocation6], 4294967280 }
  0x28   :  { %191 = dma.done.wait [#allocation3], 256  }
  0x29   :  { %192 = vsyncadd [#allocation3], 4294967040 }
  0x2a   :  { %49 = sfence }
  0x2b   :  { %v50_v0 = vlaneseq  ;;  %s111_s10 = sld [smem:[#allocation2 + $0x2]]  ;;  %s73_s12 = sld [smem:[#allocation2]]  ;;  %v86_v15 = vld [vmem:[#allocation8] sm:$0x3f]  ;;  %v87_v16 = vld [vmem:[#allocation8 + $0x8] sm:$0x3f] }
  0x2c   :  { %s112_s11 = sld [smem:[#allocation7 + $0x2]]  ;;  %s76_s13 = sld [smem:[#allocation7]] }
  0x2d   :  { %v51_v1 = vshrl.u32 %v50_v0, 7  ;;  %s113_s14 = sld [smem:[#allocation2 + $0x1]]  ;;  %s198_s15 = smov [#allocation9]  }
  0x2e   :  { %s114_s2 = sld [smem:[#allocation7 + $0x1]]  ;;  %s100_s16 = sshll.u32 %s198_s15, 4  ;;  %s101_s16 = int_to_ptr.vmem [resolvable:$true] %s100_s16 }
  0x2f   :  { %v246_v2 = vmul.u32.u64.low 2863311531, %v51_v1  ;;  %v247_v3 = vmul.u32.u64.high 2863311531, %v51_v1, %v246_v2  ;;  %s165_s17 = scalar_lea.vmem %s101_s16, 256  ;;  %p170_p3 = scmp.lt.s32.totalorder %s101_s16, %s101_s16 }
  0x30   :  { %p166_p2 = scmp.ne.s32.totalorder %s101_s16, %s165_s17  ;;  %p171_p4 = scmp.lt.s32.totalorder %s165_s17, %s165_s17 }
  0x31   :  { %v58_v4 = vshrl.u32 %v247_v3, 1  ;;  %v69_v8 = vstv %s111_s10  ;;  %v74_v10 = vstv %s73_s12 }
  0x32   :  { %v71_v9 = vstv %s112_s11  ;;  %v77_v11 = vstv %s76_s13  ;;  %p172_p5 = por %p171_p4, %p170_p3 }
  0x33   :  { %v59_v5 = vmul.u32 3, %v58_v4  ;;  %v81_v13 = vstv %s113_s14 }
  0x34   :  { %v84_v14 = vstv %s114_s2  ;;  %p173_p6 = pnand %p172_p5, %p166_p2 }
  0x35   :  { %v60_v6 = vsub.s32 %v51_v1, %v59_v5 }
  0x37   :  { %vm63_vm0 = vcmp.ne.s32.totalorder %v60_v6, 0  ;;  %vm64_vm1 = vcmp.lt.s32.totalorder %v60_v6, 0  ;;  %v66_v7 = vadd.s32 3, %v60_v6 }
  0x38   :  { %vm65_vm2 = vmand %vm64_vm1, %vm63_vm0 }
  0x39   :  { %v67_v12 = vsel %vm65_vm2, %v66_v7, %v60_v6 }
  0x3a   :  { %vm72_vm3 = vcmp.eq.s32.totalorder %v67_v12, 0  ;;  %vm79_vm4 = vcmp.eq.s32.totalorder %v67_v12, 1 }
  0x3b   :  { %v75_v17 = vsel %vm72_vm3, %v74_v10, %v69_v8  ;;  %v78_v18 = vsel %vm72_vm3, %v77_v11, %v71_v9 }
  0x3c   :  { %v82_v19 = vsel %vm79_vm4, %v81_v13, %v75_v17  ;;  %v85_v20 = vsel %vm79_vm4, %v84_v14, %v78_v18 }
  0x3d   :  { %v88_v21 = vmul.f32 %v86_v15, %v82_v19  ;;  %v89_v22 = vmul.f32 %v87_v16, %v82_v19 }
  0x3f   :  { %v90_v23 = vadd.f32 %v88_v21, %v85_v20  ;;  %v91_v24 = vadd.f32 %v89_v22, %v85_v20 }
  0x41   :  { %92 = vst [vmem:[#allocation9] sm:$0x3f] %v90_v23  ;;  %93 = vst [vmem:[#allocation9 + $0x8] sm:$0x3f] %v91_v24 }
  0x42   :  { %176 = shalt.err (!%p173_p6)
}
  0x43   :  { %s177_s20 = scalar_lea.hbm %s265_s3, 256 }
  0x44   :  { %p178_p7 = scmp.ne.s32.totalorder %s265_s3, %s177_s20  ;;  %p181_p8 = scmp.lt.u32.totalorder %s177_s20, %s265_s3 }
  0x46   :  { %p183_p9 = pnand %p181_p8, %p178_p7 }
  0x48   :  { %186 = shalt.err (!%p183_p9)
}
  0x49   :  { %103 = dma.vmem_to_hbm [thread:$0]  %s101_s16, 256, %s265_s3, [#allocation4]  }
  0x4a   :  { %193 = dma.done.wait [#allocation4], 256  }
  0x4b   :  { %194 = vsyncadd [#allocation4], 4294967040 }
  0x4c   :  { %107 = vsyncpa [#allocation3], 1 }
  0x4d   :  { %108 = vsyncpa [#allocation4], 1 }
  0x4e   :  { %109 = vsyncpa [#allocation5], 1 }
  0x4f   :  { %110 = vsyncpa [#allocation6], 1 }

</bundles_post_ra>
